<compile_context>
chip_gen: v7x
topology: tpu7x:2x2x1
jax: 0.10.0
libtpu: 0.0.40
codegen_flags: <defaults>
</compile_context>

<pallas_src>
import jax
import jax.numpy as jnp
from jax.experimental import pallas as pl
from jax.experimental.pallas import tpu as pltpu


def _ce_kernel(scalars_ref, x_ref, out_ref):
    # scalars_ref: SMEM int32[2] = [domain, B_valid]   (scalar prefetch)
    # x_ref:       VMEM (C, TB) logits block  (classes on sublanes, batch on lanes)
    # out_ref:     VMEM (1, 128) per-lane partial loss sums for this tile
    dom = scalars_ref[0]
    n_valid = scalars_ref[1]

    x = x_ref[...].astype(jnp.float32)                    # (C, TB)
    _, TB = x.shape

    # Numerically stable log-sum-exp over the class (sublane) axis.
    m = jnp.max(x, axis=0, keepdims=True)                 # (1, TB)
    lse = jnp.log(jnp.sum(jnp.exp(x - m), axis=0, keepdims=True))  # (1, TB)

    # Direct read of the target-class logits row (no one-hot / 0*inf hazard).
    x_dom = x_ref[pl.ds(dom, 1), :].astype(jnp.float32)   # (1, TB)

    loss = (m - x_dom) + lse                              # (1, TB) = -log softmax[dom]

    # Zero contributions from padded batch columns.
    col = (jax.lax.broadcasted_iota(jnp.int32, (1, TB), 1)
           + pl.program_id(0) * TB)
    loss = jnp.where(col < n_valid, loss, 0.0)

    # Fold TB lanes down to 128 per-lane partial sums (cheap unrolled VPU adds,
    # keeps the per-tile writeback tiny and lane-dense).
    acc = loss[:, 0:128]
    for k in range(1, TB // 128):
        acc = acc + loss[:, k * 128:(k + 1) * 128]
    out_ref[...] = acc


def cross_entropy_loss(x, domain, num_classes=2):
    """x: (B, C) logits (f32 or bf16); domain: scalar int class index."""
    B, C = x.shape
    assert C == num_classes

    # Lane tile along the batch axis. Big tiles amortize per-step overhead;
    # even the largest choice here is only a few hundred KiB of VMEM per buffer.
    TB = 8192
    if B <= TB:
        TB = max(128, pl.cdiv(B, 128) * 128)
    num_tiles = pl.cdiv(B, TB)
    B_pad = num_tiles * TB

    # Lane-dense layout: (B, C) -> (C, B), pad batch to a tile multiple.
    x_t = jnp.transpose(x)
    if B_pad != B:
        x_t = jnp.pad(x_t, ((0, 0), (0, B_pad - B)))

    scalars = jnp.asarray([domain, B], dtype=jnp.int32)

    partials = pl.pallas_call(
        _ce_kernel,
        out_shape=jax.ShapeDtypeStruct((1, num_tiles * 128), jnp.float32),
        grid_spec=pltpu.PrefetchScalarGridSpec(
            num_scalar_prefetch=1,
            grid=(num_tiles,),
            in_specs=[pl.BlockSpec((C, TB), lambda i, s: (0, i))],
            out_specs=pl.BlockSpec((1, 128), lambda i, s: (0, i)),
        ),
        compiler_params=pltpu.CompilerParams(
            dimension_semantics=("parallel",)),
    )(scalars, x_t)

    # Finish the mean in JAX with a precomputed 1/B (tiny reduce over 128*num_tiles).
    return jnp.sum(partials) * (1.0 / B)


def _reference(x, domain):
    # Pure-JAX reference matching the PyTorch forward.
    probs = jax.nn.softmax(x, axis=1)
    label = jax.nn.one_hot(jnp.full((x.shape[0],), domain), x.shape[1],
                           dtype=jnp.float32)
    loss = -(jnp.log(probs) * label).sum(-1)
    return loss.mean(-1)


if __name__ == "__main__":
    num_classes = 2
    key = jax.random.PRNGKey(0)
    k1, k2 = jax.random.split(key)

    # Small case matching the module's (B, C) logits.
    B = 8
    x = jax.random.normal(k1, (B, num_classes), dtype=jnp.float32)
    domain = 1
    loss = jax.block_until_ready(cross_entropy_loss(x, domain, num_classes))
    ref = _reference(x, domain)
    assert jnp.allclose(loss, ref, atol=1e-5, rtol=1e-4), (loss, ref)

    # Multi-tile + padding/masking path (still tiny data).
    B2 = 20000
    x2 = jax.random.normal(k2, (B2, num_classes), dtype=jnp.float32)
    loss2 = jax.block_until_ready(cross_entropy_loss(x2, 0, num_classes))
    ref2 = _reference(x2, 0)
    assert jnp.allclose(loss2, ref2, atol=1e-5, rtol=1e-4), (loss2, ref2)

    print("KERNEL_OK")
</pallas_src>

<mosaic_0001>
module attributes {stable_mosaic.version = 11 : i64} {
  func.func @_ce_kernel(%arg0: i32, %arg1: memref<2xi32, #tpu.memory_space<smem>>, %arg2: memref<2x128xf32, #tpu.memory_space<vmem>>, %arg3: memref<1x128xf32, #tpu.memory_space<vmem>>) attributes {dimension_semantics = [#tpu.dimension_semantics<parallel>], iteration_bounds = array<i64: 1>, scalar_prefetch = 1 : i64, scratch_operands = 0 : i64, tpu.core_type = #tpu.core_type<tc>, window_params = [{transform_indices = @transform_0, window_bounds = array<i64: 2, 128>}, {transform_indices = @transform_1, window_bounds = array<i64: 1, 128>}]} {
    %c0 = arith.constant 0 : index
    %0 = memref.load %arg1[%c0] : memref<2xi32, #tpu.memory_space<smem>>
    %c1 = arith.constant 1 : index
    %1 = memref.load %arg1[%c1] : memref<2xi32, #tpu.memory_space<smem>>
    %c0_0 = arith.constant 0 : index
    %c0_1 = arith.constant 0 : index
    %2 = vector.load %arg2[%c0_0, %c0_1] : memref<2x128xf32, #tpu.memory_space<vmem>>, vector<2x128xf32>
    %cst = arith.constant dense<0xFF800000> : vector<128xf32>
    %3 = vector.multi_reduction <maximumf>, %2, %cst [0] : vector<2x128xf32> to vector<128xf32>
    %4 = vector.shape_cast %3 : vector<128xf32> to vector<1x128xf32>
    %5 = vector.broadcast %4 : vector<1x128xf32> to vector<2x128xf32>
    %6 = arith.subf %2, %5 : vector<2x128xf32>
    %7 = math.exp %6 : vector<2x128xf32>
    %cst_2 = arith.constant dense<0.000000e+00> : vector<128xf32>
    %8 = vector.multi_reduction <add>, %7, %cst_2 [0] : vector<2x128xf32> to vector<128xf32>
    %9 = vector.shape_cast %8 : vector<128xf32> to vector<1x128xf32>
    %10 = math.log %9 : vector<1x128xf32>
    %11 = arith.index_cast %0 : i32 to index
    %c0_3 = arith.constant 0 : index
    %12 = vector.load %arg2[%11, %c0_3] : memref<2x128xf32, #tpu.memory_space<vmem>>, vector<1x128xf32>
    %13 = arith.subf %4, %12 : vector<1x128xf32>
    %14 = arith.addf %13, %10 : vector<1x128xf32>
    %15 = tpu.iota {dimensions = array<i32: 1>} : vector<1x128xi32>
    %c128_i32 = arith.constant 128 : i32
    %16 = arith.muli %arg0, %c128_i32 : i32
    %17 = vector.broadcast %16 : i32 to vector<1x128xi32>
    %18 = arith.addi %15, %17 : vector<1x128xi32>
    %19 = vector.broadcast %1 : i32 to vector<1x128xi32>
    %20 = arith.cmpi slt, %18, %19 : vector<1x128xi32>
    %cst_4 = arith.constant 0.000000e+00 : f32
    %21 = vector.broadcast %cst_4 : f32 to vector<1x128xf32>
    %22 = arith.select %20, %14, %21 : vector<1x128xi1>, vector<1x128xf32>
    %c0_5 = arith.constant 0 : index
    %c0_6 = arith.constant 0 : index
    %23 = vector.load %arg3[%c0_5, %c0_6] : memref<1x128xf32, #tpu.memory_space<vmem>>, vector<1x128xf32>
    tpu.vector_store %arg3[%c0_5, %c0_6], %22 {strides = array<i32>} : memref<1x128xf32, #tpu.memory_space<vmem>>, vector<1x128xf32>,
    return
  }
  func.func @transform_0(%arg0: i32, %arg1: memref<2xi32, #tpu.memory_space<smem>>) -> (i32, i32) {
    %c0_i32 = arith.constant 0 : i32
    %c0_i32_0 = arith.constant 0 : i32
    return %c0_i32, %arg0 : i32, i32
  }
  func.func @transform_1(%arg0: i32, %arg1: memref<2xi32, #tpu.memory_space<smem>>) -> (i32, i32) {
    %c0_i32 = arith.constant 0 : i32
    %c0_i32_0 = arith.constant 0 : i32
    return %c0_i32, %arg0 : i32, i32
  }
}

</mosaic_0001>

<bundles_post_ra>
// kernel: tpu_custom_call.1
= control target key start
LH: loop header
LB: loop body
LE: loop exit
PB: predicated region body
PF: predicated region fallthrough
CT: control target
= control target key end

     0   :  { %s155_s0 = inlined_call_operand.hbm [shape: s32[2], index: 0, kind: input, shape index: {}]   ;;  %s156_s1 = inlined_call_operand.vmem [shape: f32[2,128], index: 1, kind: input, shape index: {}]   ;;  %s157_s2 = inlined_call_operand.hbm [shape: f32[1,128], index: 2, kind: output, shape index: {}]  }
   0x1   :  { %s72_s11 = scalar_lea.hbm %s155_s0, 16 }
   0x2   :  { %p73_p0 = scmp.ne.s32.totalorder %s155_s0, %s72_s11  ;;  %p76_p1 = scmp.lt.u32.totalorder %s72_s11, %s155_s0 }
   0x4   :  { %p78_p2 = pnand %p76_p1, %p73_p0 }
   0x6   :  { %81 = shalt.err (!%p78_p2)  }
   0x7   :  { %s108_s16 = smov [#allocation3]  }
   0x8   :  { %8 = dma.hbm_to_smem %s155_s0, 16, %s108_s16, [#allocation2] }
   0x9   :  { %104 = dma.done.wait [#allocation2], 16 }
   0xa   :  { %105 = vsyncadd [#allocation2], 4294967280 }
   0xb   :  { %10 = sfence }
   0xc   :  { %v16_v0 = vld [vmem:[%s156_s1] sm:$0x3]  ;;  %vm17_vm0 = vcmask 1041408  }
   0xd   :  { %11 = vsyncpa [#allocation5], 0  ;;  %v18_v1 = vsel %vm17_vm0, %v16_v0, -inf  ;;  %s14_s0 = sld [smem:[#allocation3]]  ;;  %s65_s21 = sld [smem:[#allocation3 + $0x1]]  ;;  %v41_v18 = vlaneseq }
   0xe   :  { %v19_v2 = vrot.slane %v18_v1, 4  ;;  %s109_s25 = smov [#allocation4]  }
   0xf   :  { %v42_v20 = vand.u32 127, %v41_v18  ;;  %s56_s26 = sshll.u32 %s109_s25, 4  ;;  %s57_s26 = int_to_ptr.vmem [resolvable:$true] %s56_s26 }
  0x10   :  { %v20_v3 = vmax.f32 %v18_v1, %v19_v2  ;;  %s82_s27 = scalar_lea.vmem %s57_s26, 16  ;;  %s86_s28 = scalar_lea.vmem %s57_s26, 32 }
  0x11   :  { %p83_p3 = scmp.ne.s32.totalorder %s57_s26, %s82_s27  ;;  %p87_p4 = scmp.lt.s32.totalorder %s57_s26, %s57_s26 }
  0x12   :  { %v21_v4 = vrot.slane %v20_v3, 2  ;;  %p88_p5 = scmp.lt.s32.totalorder %s86_s28, %s82_s27 }
  0x13   :  { %s37_s24 = scalar_lea.vmem %s156_s1, %s14_s0  ;;  %v46_v22 = vstv %s65_s21 }
  0x14   :  { %v22_v5 = vmax.f32 %v20_v3, %v21_v4  ;;  %v38_v19 = vld [vmem:[%s37_s24] sm:$0x1]  ;;  %vm47_vm1 = vcmp.lt.s32.totalorder %v42_v20, %v46_v22  ;;  %p89_p6 = por %p88_p5, %p87_p4 }
  0x16   :  { %v23_v6 = vrot.slane %v22_v5, 1  ;;  %p90_p7 = pnand %p89_p6, %p83_p3 }
  0x18   :  { %v24_v7 = vmax.f32 %v22_v5, %v23_v6 }
  0x1a   :  { %v25_v8 = vsub.f32 %v16_v0, %v24_v7  ;;  %v39_v21 = vsub.f32 %v24_v7, %v38_v19 }
  0x1c   :  { %v26_v9 = vmul.f32 1.442695, %v25_v8 }
  0x1e   :  { %68 = vpow2.f32 %v26_v9 }
  0x28   :  { %v69_v10 = vpop.eup %68 }
  0x29   :  { %v28_v11 = vsel %vm17_vm0, %v69_v10, 0.0 }
  0x2a   :  { %v29_v12 = vrot.slane %v28_v11, 4 }
  0x2c   :  { %v30_v13 = vadd.f32 %v29_v12, %v28_v11 }
  0x2e   :  { %v31_v14 = vrot.slane %v30_v13, 2 }
  0x30   :  { %v32_v15 = vadd.f32 %v31_v14, %v30_v13 }
  0x32   :  { %v33_v16 = vrot.slane %v32_v15, 1 }
  0x34   :  { %v34_v17 = vadd.f32 %v33_v16, %v32_v15 }
  0x36   :  { %70 = vlog2.f32 %v34_v17 }
  0x40   :  { %v71_v23 = vpop.eup %70 }
  0x41   :  { %v36_v24 = vmul.f32 0.6931472, %v71_v23 }
  0x43   :  { %v40_v25 = vadd.f32 %v39_v21, %v36_v24 }
  0x45   :  { %v48_v26 = vsel %vm47_vm1, %v40_v25, 0.0 }
  0x46   :  { %49 = vst [vmem:[#allocation4] sm:$0x1] %v48_v26 }
  0x47   :  { %93 = shalt.err (!%p90_p7)
}
  0x48   :  { %s94_s30 = scalar_lea.hbm %s157_s2, 16 }
  0x49   :  { %p95_p8 = scmp.ne.s32.totalorder %s157_s2, %s94_s30  ;;  %p98_p9 = scmp.lt.u32.totalorder %s94_s30, %s157_s2 }
  0x4b   :  { %p100_p10 = pnand %p98_p9, %p95_p8 }
  0x4d   :  { %103 = shalt.err (!%p100_p10)
}
  0x4e   :  { %59 = dma.vmem_to_hbm [thread:$0]  %s57_s26, 16, %s157_s2, [#allocation5]  }
  0x4f   :  { %106 = dma.done.wait [#allocation5], 16  }
  0x50   :  { %107 = vsyncadd [#allocation5], 4294967280 }
  0x51   :  { %63 = vsyncpa [#allocation5], 1 }

</bundles_post_ra>
